<compile_context>
chip_gen: v5e
topology: v5e:2x2
jax: 0.10.0
libtpu: 0.0.40
codegen_flags: <defaults>
</compile_context>

<pallas_src>
import jax
import jax.numpy as jnp
from jax.experimental import pallas as pl
from jax.experimental.pallas import tpu as pltpu


def _make_dense_layer_kernel(c_in, growth):
    def kernel(x_ref, scale_ref, shift_ref, w_ref, b_ref, o_ref):
        # x_ref:     (C, thw)        input tile   (channels x pixels)
        # scale_ref: (C, 1)          folded BN scale  (gamma / sqrt(var + eps))
        # shift_ref: (C, 1)          folded BN shift  (beta - mean * scale)
        # w_ref:     (G, C)          1x1 conv weight
        # b_ref:     (G, 1)          conv bias
        # o_ref:     (C + G, thw)    fused concat([x, new_features]) tile
        x = x_ref[...]
        xf = x.astype(jnp.float32)
        # BN + ReLU on the VPU (per-channel affine broadcast along lanes).
        h = jnp.maximum(xf * scale_ref[...] + shift_ref[...], 0.0)
        # 1x1 conv == matmul on the MXU, f32 accumulation.
        y = jnp.dot(w_ref[...], h, preferred_element_type=jnp.float32)
        y = y + b_ref[...]
        # Fused channel concat: pass-through x -> first C rows, new features
        # -> remaining G rows of the same output block.
        o_ref[:c_in, :] = x
        o_ref[c_in:, :] = y.astype(o_ref.dtype)

    return kernel


def _choose_tile_hw(hw, c_in, growth, vmem_budget_bytes=8 << 20):
    """Pick a lane tile (multiple of 128) for the spatial axis."""
    if hw % 128 != 0:
        # Odd spatial extent: use the full axis (allowed as a full array dim).
        return hw
    # Double-buffered input + output bytes per pixel column (f32 worst case).
    per_col = 2 * 4 * (c_in + (c_in + growth))
    cap = max(128, (vmem_budget_bytes // per_col) // 128 * 128)
    return int(min(hw, 8192, cap))


def dense_layer_forward(x_nchw, gamma, beta, run_mean, run_var, conv_w, conv_b,
                        eps=1e-5, tile_hw=None):
    """x_nchw: (N, C_in, H, W). Returns (N, C_in + G, H, W)."""
    N, C, H, W = x_nchw.shape
    G = conv_w.shape[0]
    HW = H * W

    # Fold BatchNorm (eval mode) into a per-channel affine.
    inv_std = 1.0 / jnp.sqrt(run_var.astype(jnp.float32) + eps)
    g32 = gamma.astype(jnp.float32)
    scale = (g32 * inv_std).reshape(C, 1)
    shift = (beta.astype(jnp.float32)
             - run_mean.astype(jnp.float32) * g32 * inv_std).reshape(C, 1)

    # 1x1 conv weight (G, C, 1, 1) -> (G, C); bias -> (G, 1).
    w = conv_w.reshape(G, C).astype(jnp.float32)
    b = conv_b.reshape(G, 1).astype(jnp.float32)

    # NCHW -> (N, C, H*W): pure metadata reshape, no transpose / HBM pass.
    x_flat = x_nchw.reshape(N, C, HW)

    thw = tile_hw if tile_hw is not None else _choose_tile_hw(HW, C, G)
    grid = (N, pl.cdiv(HW, thw))

    out_flat = pl.pallas_call(
        _make_dense_layer_kernel(C, G),
        out_shape=jax.ShapeDtypeStruct((N, C + G, HW), x_nchw.dtype),
        grid_spec=pltpu.PrefetchScalarGridSpec(
            num_scalar_prefetch=0,
            grid=grid,
            in_specs=[
                pl.BlockSpec((None, C, thw), lambda n, j: (n, 0, j)),  # x tile
                pl.BlockSpec((C, 1), lambda n, j: (0, 0)),             # scale
                pl.BlockSpec((C, 1), lambda n, j: (0, 0)),             # shift
                pl.BlockSpec((G, C), lambda n, j: (0, 0)),             # weight
                pl.BlockSpec((G, 1), lambda n, j: (0, 0)),             # bias
            ],
            out_specs=pl.BlockSpec((None, C + G, thw), lambda n, j: (n, 0, j)),
        ),
        compiler_params=pltpu.CompilerParams(
            dimension_semantics=("parallel", "parallel")),
    )(x_flat, scale, shift, w, b)

    # Dropout2d(0.1) is identity in eval mode.
    return out_flat.reshape(N, C + G, H, W)


def _reference(x_nchw, gamma, beta, run_mean, run_var, conv_w, conv_b, eps=1e-5):
    # Pure-JAX reference of the same eval-mode forward.
    xc = x_nchw.astype(jnp.float32)
    g = gamma.reshape(1, -1, 1, 1)
    bta = beta.reshape(1, -1, 1, 1)
    mu = run_mean.reshape(1, -1, 1, 1)
    var = run_var.reshape(1, -1, 1, 1)
    h = jnp.maximum((xc - mu) / jnp.sqrt(var + eps) * g + bta, 0.0)
    y = jnp.einsum('nchw,gc->nghw', h, conv_w.reshape(conv_w.shape[0], -1))
    y = y + conv_b.reshape(1, -1, 1, 1)
    return jnp.concatenate([x_nchw, y.astype(x_nchw.dtype)], axis=1)


if __name__ == "__main__":
    key = jax.random.PRNGKey(0)
    N, C_in, H, W = 2, 4, 16, 16
    growth_rate = 32

    k_x, k_g, k_b, k_m, k_v, k_w, k_cb = jax.random.split(key, 7)
    x = jax.random.normal(k_x, (N, C_in, H, W), dtype=jnp.float32)

    # Deterministic (non-trivial) BatchNorm + Conv parameters.
    gamma = 1.0 + 0.1 * jax.random.normal(k_g, (C_in,), dtype=jnp.float32)
    beta = 0.1 * jax.random.normal(k_b, (C_in,), dtype=jnp.float32)
    run_mean = 0.1 * jax.random.normal(k_m, (C_in,), dtype=jnp.float32)
    run_var = 1.0 + 0.1 * jax.random.uniform(k_v, (C_in,), dtype=jnp.float32)
    conv_w = 0.1 * jax.random.normal(k_w, (growth_rate, C_in, 1, 1), dtype=jnp.float32)
    conv_b = 0.01 * jax.random.normal(k_cb, (growth_rate,), dtype=jnp.float32)

    out = dense_layer_forward(x, gamma, beta, run_mean, run_var, conv_w, conv_b)
    out = jax.block_until_ready(out)

    ref = _reference(x, gamma, beta, run_mean, run_var, conv_w, conv_b)
    assert out.shape == (N, C_in + growth_rate, H, W), out.shape
    assert jnp.allclose(out, ref, atol=1e-4, rtol=1e-4), \
        float(jnp.max(jnp.abs(out - ref)))

    print("KERNEL_OK")
</pallas_src>

<mosaic_0001>
module attributes {stable_mosaic.version = 11 : i64} {
  func.func @kernel(%arg0: i32, %arg1: i32, %arg2: memref<1x4x256xf32, #tpu.memory_space<vmem>>, %arg3: memref<4x1xf32, #tpu.memory_space<vmem>>, %arg4: memref<4x1xf32, #tpu.memory_space<vmem>>, %arg5: memref<32x4xf32, #tpu.memory_space<vmem>>, %arg6: memref<32x1xf32, #tpu.memory_space<vmem>>, %arg7: memref<1x36x256xf32, #tpu.memory_space<vmem>>) attributes {dimension_semantics = [#tpu.dimension_semantics<parallel>, #tpu.dimension_semantics<parallel>], iteration_bounds = array<i64: 2, 1>, scalar_prefetch = 0 : i64, scratch_operands = 0 : i64, tpu.core_type = #tpu.core_type<tc>, window_params = [{transform_indices = @transform_0, window_bounds = array<i64: 1, 4, 256>}, {pipeline_mode = #tpu.pipeline_mode<synchronous>, transform_indices = @transform_1, window_bounds = array<i64: 4, 1>}, {pipeline_mode = #tpu.pipeline_mode<synchronous>, transform_indices = @transform_2, window_bounds = array<i64: 4, 1>}, {pipeline_mode = #tpu.pipeline_mode<synchronous>, transform_indices = @transform_3, window_bounds = array<i64: 32, 4>}, {pipeline_mode = #tpu.pipeline_mode<synchronous>, transform_indices = @transform_4, window_bounds = array<i64: 32, 1>}, {transform_indices = @transform_5, window_bounds = array<i64: 1, 36, 256>}]} {
    %c0 = arith.constant 0 : index
    %c0_0 = arith.constant 0 : index
    %c0_1 = arith.constant 0 : index
    %0 = vector.load %arg2[%c0, %c0_0, %c0_1] : memref<1x4x256xf32, #tpu.memory_space<vmem>>, vector<1x4x256xf32>
    %1 = vector.shape_cast %0 : vector<1x4x256xf32> to vector<4x256xf32>
    %c0_2 = arith.constant 0 : index
    %c0_3 = arith.constant 0 : index
    %2 = vector.load %arg3[%c0_2, %c0_3] : memref<4x1xf32, #tpu.memory_space<vmem>>, vector<4x1xf32>
    %3 = vector.broadcast %2 : vector<4x1xf32> to vector<4x256xf32>
    %4 = arith.mulf %1, %3 : vector<4x256xf32>
    %c0_4 = arith.constant 0 : index
    %c0_5 = arith.constant 0 : index
    %5 = vector.load %arg4[%c0_4, %c0_5] : memref<4x1xf32, #tpu.memory_space<vmem>>, vector<4x1xf32>
    %6 = vector.broadcast %5 : vector<4x1xf32> to vector<4x256xf32>
    %7 = arith.addf %4, %6 : vector<4x256xf32>
    %cst = arith.constant 0.000000e+00 : f32
    %8 = vector.broadcast %cst : f32 to vector<4x256xf32>
    %9 = arith.maximumf %7, %8 : vector<4x256xf32>
    %c0_6 = arith.constant 0 : index
    %c0_7 = arith.constant 0 : index
    %10 = vector.load %arg5[%c0_6, %c0_7] : memref<32x4xf32, #tpu.memory_space<vmem>>, vector<32x4xf32>
    %cst_8 = arith.constant dense<0.000000e+00> : vector<32x256xf32>
    %11 = tpu.matmul %10, %9, %cst_8 {dimension_numbers = #tpu.dot_dimension_numbers<[1], [0], [0], [1], [0, 0, 1, 1], [], []>} : vector<32x4xf32>, vector<4x256xf32>, vector<32x256xf32> -> vector<32x256xf32>
    %c0_9 = arith.constant 0 : index
    %c0_10 = arith.constant 0 : index
    %12 = vector.load %arg6[%c0_9, %c0_10] : memref<32x1xf32, #tpu.memory_space<vmem>>, vector<32x1xf32>
    %13 = vector.broadcast %12 : vector<32x1xf32> to vector<32x256xf32>
    %14 = arith.addf %11, %13 : vector<32x256xf32>
    %c0_11 = arith.constant 0 : index
    %c0_12 = arith.constant 0 : index
    %c0_13 = arith.constant 0 : index
    %15 = vector.load %arg7[%c0_11, %c0_12, %c0_13] : memref<1x36x256xf32, #tpu.memory_space<vmem>>, vector<1x4x256xf32>
    %16 = vector.shape_cast %15 : vector<1x4x256xf32> to vector<4x256xf32>
    %17 = vector.shape_cast %1 : vector<4x256xf32> to vector<1x4x256xf32>
    tpu.vector_store %arg7[%c0_11, %c0_12, %c0_13], %17 {strides = array<i32>} : memref<1x36x256xf32, #tpu.memory_space<vmem>>, vector<1x4x256xf32>,
    %c0_14 = arith.constant 0 : index
    %c4 = arith.constant 4 : index
    %c0_15 = arith.constant 0 : index
    %18 = vector.load %arg7[%c0_14, %c4, %c0_15] : memref<1x36x256xf32, #tpu.memory_space<vmem>>, vector<1x32x256xf32>
    %19 = vector.shape_cast %18 : vector<1x32x256xf32> to vector<32x256xf32>
    %20 = vector.shape_cast %14 : vector<32x256xf32> to vector<1x32x256xf32>
    tpu.vector_store %arg7[%c0_14, %c4, %c0_15], %20 {strides = array<i32>} : memref<1x36x256xf32, #tpu.memory_space<vmem>>, vector<1x32x256xf32>,
    return
  }
  func.func @transform_0(%arg0: i32, %arg1: i32) -> (i32, i32, i32) {
    %c0_i32 = arith.constant 0 : i32
    %c0_i32_0 = arith.constant 0 : i32
    return %arg0, %c0_i32, %arg1 : i32, i32, i32
  }
  func.func @transform_1(%arg0: i32, %arg1: i32) -> (i32, i32) {
    %c0_i32 = arith.constant 0 : i32
    %c0_i32_0 = arith.constant 0 : i32
    %c0_i32_1 = arith.constant 0 : i32
    return %c0_i32, %c0_i32_0 : i32, i32
  }
  func.func @transform_2(%arg0: i32, %arg1: i32) -> (i32, i32) {
    %c0_i32 = arith.constant 0 : i32
    %c0_i32_0 = arith.constant 0 : i32
    %c0_i32_1 = arith.constant 0 : i32
    return %c0_i32, %c0_i32_0 : i32, i32
  }
  func.func @transform_3(%arg0: i32, %arg1: i32) -> (i32, i32) {
    %c0_i32 = arith.constant 0 : i32
    %c0_i32_0 = arith.constant 0 : i32
    %c0_i32_1 = arith.constant 0 : i32
    return %c0_i32, %c0_i32_0 : i32, i32
  }
  func.func @transform_4(%arg0: i32, %arg1: i32) -> (i32, i32) {
    %c0_i32 = arith.constant 0 : i32
    %c0_i32_0 = arith.constant 0 : i32
    %c0_i32_1 = arith.constant 0 : i32
    return %c0_i32, %c0_i32_0 : i32, i32
  }
  func.func @transform_5(%arg0: i32, %arg1: i32) -> (i32, i32, i32) {
    %c0_i32 = arith.constant 0 : i32
    %c0_i32_0 = arith.constant 0 : i32
    return %arg0, %c0_i32, %arg1 : i32, i32, i32
  }
}

</mosaic_0001>

<bundles_post_ra>
// kernel: tpu_custom_call.1
= control target key start
LH: loop header
LB: loop body
LE: loop exit
PB: predicated region body
PF: predicated region fallthrough
CT: control target
= control target key end

     0   :  { %s642_s18 = smov 0   ;;  %s644_s19 = smov 0   ;;  %s741_s0 = inlined_call_operand.vmem [shape: f32[2,4,256], index: 0, kind: input, shape index: {}]   ;;  %s742_s1 = inlined_call_operand.vmem [shape: f32[4,1], index: 1, kind: input, shape index: {}]   ;;  %s743_s2 = inlined_call_operand.vmem [shape: f32[4,1], index: 2, kind: input, shape index: {}]   ;;  %s744_s3 = inlined_call_operand.vmem [shape: f32[32,4], index: 3, kind: input, shape index: {}]   ;;  %s745_s4 = inlined_call_operand.vmem [shape: f32[32,1], index: 4, kind: input, shape index: {}]   ;;  %s746_s5 = inlined_call_operand.vmem [shape: f32[2,36,256], index: 5, kind: output, shape index: {}]  }
   0x1   :  { %s646_s20 = smov 0  }
   0x2 LB: > { %s27_s21 = sadd.s32 1, %s604_s19  ;;  %p537_p0 = scmp.ge.s32.totalorder %s608_s20, 1  ;;  %s608_s20 = sphi %s646_s20, %s15_s20   ;;  %s604_s19 = sphi %s644_s19, %s748_s19   ;;  %s600_s18 = sphi %s642_s18, %s747_s18  }
   0x3   : > { %p29_p1 = scmp.ge.s32.totalorder %s27_s21, 2  ;;  %p208_p2 = scmp.lt.s32.totalorder %s608_s20, 3 }
   0x5   : > { %s750_s21 = smov (%p29_p1, %s27_s21), 0  ;;  %p209_p3 = pnand %p537_p0, %p208_p2 }
   0x6   : > { %p245_p4 = scmp.lt.s32.totalorder (!%p209_p3), %s600_s18, 1 }
   0x7   : > { %212 = sbr.rel (%p209_p3) target bundleno = 301 (0x12d), region = 40 }
   0xc   : > { %v265_v0 = vld [vmem:[%s742_s1] sm:$0xf]  ;;  %v610_v1 = vmov 0   ;;  %s752_s18 = smov (!%p245_p4, %s600_s18), 1  ;;  %v611_v3 = vmov 839922192  }
   0xd   : > { %583 = vset.pattern.permute.xlu0 %v610_v1  ;;  %584 = vset.pattern.permute.xlu1 %v610_v1  ;;  %v276_v2 = vld [vmem:[%s743_s2] sm:$0xf]  ;;  %v271_v4 = vunpack.c.l.s4 %v611_v3  ;;  %s553_s26 = sshll.u32 %s752_s18, 3  ;;  %v294_v8 = vld [vmem:[%s745_s4 + $0x10] sm:$0xff]  ;;  %v293_v12 = vld [vmem:[%s745_s4 + $0x8] sm:$0xff]  ;;  %vm333_vm0 = vcmask 1043456  }
   0xe   : > { %268 = vperm.xlu0 %583, %v265_v0   ;;  %585 = vset.pattern.permute.xlu2 %v610_v1  ;;  %v292_v7 = vld [vmem:[%s745_s4] sm:$0xff]  ;;  %s252_s8 = scalar_lea.vmem %s741_s0, %s553_s26  ;;  %v295_v13 = vld [vmem:[%s745_s4 + $0x18] sm:$0xff]  ;;  %vm320_vm1 = vcmask 31744   ;;  %v290_v19 = vld [vmem:[%s744_s3 + $0x10] sm:$0xff]  ;;  %s556_s17 = smul.u32 80, %s752_s18 }
   0xf   : > { %v272_v6 = vunpack.c.0.s8 %v271_v4  ;;  %298 = vperm.xlu1 %584, %v292_v7   ;;  %308 = vperm.xlu2 %585, %v294_v8   ;;  %v264_v10 = vld [vmem:[%s252_s8] sm:$0xff]  ;;  %v289_v22 = vld [vmem:[%s744_s3 + $0x8] sm:$0xff]  ;;  %v291_v23 = vld [vmem:[%s744_s3 + $0x18] sm:$0xff] }
  0x10   : > { %v288_v18 = vld [vmem:[%s744_s3] sm:$0xff]  ;;  %s708_s28 = scalar_lea.vmem %s746_s5, %s556_s17 }
  0x16   : > { %279 = vperm.xlu0 %583, %v276_v2  }
  0x17   : > { %303 = vperm.xlu1 %584, %v293_v12   ;;  %313 = vperm.xlu2 %585, %v295_v13  }
  0x69   : > { %v309_v32 = vpop.permute.xlu2 %308 }
  0x71   : > { %v314_v49 = vpop.permute.xlu2 %313 }
  0x80   : > { %v269_v5 = vpop.permute.xlu0 %268 }
  0x81   : > { %v273_v9 = vperm.slane %v269_v5, %v272_v6  ;;  %v299_v26 = vpop.permute.xlu1 %298 }
  0x83   : > { %v275_v14 = vmul.f32 %v273_v9, %v264_v10 }
  0x88   : > { %v280_v11 = vpop.permute.xlu0 %279 }
  0x89   : > { %v284_v15 = vperm.slane %v280_v11, %v272_v6  ;;  %v304_v37 = vpop.permute.xlu1 %303 }
  0x8b   : > { %v286_v16 = vadd.f32 %v284_v15, %v275_v14 }
  0x8d   : > { %v287_v17 = vmax.f32 %v286_v16, 0.0 }
  0x8f   : > { %317 = vst [vmem:[#allocation1] ss:$2 sm:$0xff] %v287_v17 }
  0x96   : > { %v318_v20 = vld.sshfl [vmem:[#allocation1] sm:$0xff pattern:$0x75316420]  ;;  %v319_v21 = vld.sshfl [vmem:[#allocation1 + $0x8] sm:$0xff pattern:$0x75316420] }
  0x97   : > { %541 = vmatpush.msk.msra.mxu0 %vm333_vm0, %v318_v20  ;;  %554 = vmatpush.msk.msra.mxu2 %vm333_vm0, %v318_v20  ;;  %397 = vst [vmem:[#allocation1] ss:$2 sm:$0xff] %v264_v10 }
  0x98   : > { %546 = vmatpush.msk.msra.mxu1 %vm333_vm0, %v319_v21  ;;  %555 = vmatpush.msk.msra.mxu3 %vm333_vm0, %v319_v21 }
  0x99   : > { %542 = vmatmul.msk.f32.vlgmr.msra.gmra.mxu0 %vm320_vm1, %v288_v18  ;;  %544 = vmatmul.msk.f32.vlgmr.msra.gmra.mxu2 %vm320_vm1, %v290_v19 }
  0x9a   : > { %547 = vmatmul.msk.f32.vlgmr.msra.gmra.mxu1 %vm320_vm1, %v288_v18  ;;  %549 = vmatmul.msk.f32.vlgmr.msra.gmra.mxu3 %vm320_vm1, %v290_v19 }
  0x9e   : > { %v398_v24 = vld.sshfl [vmem:[#allocation1] sm:$0xff pattern:$0x75316420]  ;;  %v399_v25 = vld.sshfl [vmem:[#allocation1 + $0x8] sm:$0xff pattern:$0x75316420] }
  0x9f   : > { %402 = vst [vmem:[%s708_s28] sm:$0xf] %v398_v24 }
  0xa0   : > { %403 = vst [vmem:[%s708_s28 + $0x8] sm:$0xf] %v399_v25 }
  0xa1   : > { %543 = vmatmul.msk.f32.gmra.mxu0 %vm320_vm1, %v289_v22  ;;  %545 = vmatmul.msk.f32.gmra.mxu2 %vm320_vm1, %v291_v23 }
  0xa2   : > { %548 = vmatmul.msk.f32.gmra.mxu1 %vm320_vm1, %v289_v22  ;;  %550 = vmatmul.msk.f32.gmra.mxu3 %vm320_vm1, %v291_v23 }
 0x116   : > { %v355_v27 = vpop.f32.mrf.mxu0 }
 0x117   : > { %v356_v28 = vadd.f32 %v355_v27, %v299_v26  ;;  %v384_v29 = vpop.f32.mrf.mxu1 }
 0x118   : > { %v385_v30 = vadd.f32 %v384_v29, %v299_v26 }
 0x119   : > { %v412_v31 = vrot.slane %v356_v28, 4 }
 0x11a   : > { %v413_v33 = vrot.slane %v385_v30, 4 }
 0x11b   : > { %436 = vst [vmem:[%s708_s28] sm:$0xf0] %v412_v31 }
 0x11c   : > { %437 = vst [vmem:[%s708_s28 + $0x8] sm:$0xf0] %v413_v33  ;;  %v361_v34 = vpop.f32.mrf.mxu2 }
 0x11d   : > { %v362_v35 = vadd.f32 %v361_v34, %v309_v32  ;;  %v390_v36 = vpop.f32.mrf.mxu3 }
 0x11e   : > { %v391_v38 = vadd.f32 %v390_v36, %v309_v32  ;;  %v358_v39 = vpop.f32.mrf.mxu0 }
 0x11f   : > { %v359_v40 = vadd.f32 %v358_v39, %v304_v37  ;;  %v387_v41 = vpop.f32.mrf.mxu1  ;;  %v418_v43 = vrot.slane %v362_v35, 4 }
 0x120   : > { %v388_v42 = vadd.f32 %v387_v41, %v304_v37  ;;  %v420_v45 = vrot.slane %v391_v38, 4 }
 0x121   : > { %v414_v44 = vrot.slane %v359_v40, 4 }
 0x122   : > { %v416_v46 = vrot.slane %v388_v42, 4 }
 0x123   : > { %v415_v47 = vsel %vm333_vm0, %v412_v31, %v414_v44  ;;  %v419_v48 = vsel %vm333_vm0, %v414_v44, %v418_v43 }
 0x124   : > { %438 = vst [vmem:[%s708_s28 + $0x10] sm:$0xff] %v415_v47  ;;  %v417_v50 = vsel %vm333_vm0, %v413_v33, %v416_v46  ;;  %v421_v51 = vsel %vm333_vm0, %v416_v46, %v420_v45  ;;  %v364_v52 = vpop.f32.mrf.mxu2 }
 0x125   : > { %440 = vst [vmem:[%s708_s28 + $0x20] sm:$0xff] %v419_v48  ;;  %v365_v53 = vadd.f32 %v364_v52, %v314_v49  ;;  %v393_v54 = vpop.f32.mrf.mxu3 }
 0x126   : > { %439 = vst [vmem:[%s708_s28 + $0x18] sm:$0xff] %v417_v50  ;;  %v394_v55 = vadd.f32 %v393_v54, %v314_v49 }
 0x127   : > { %441 = vst [vmem:[%s708_s28 + $0x28] sm:$0xff] %v421_v51  ;;  %v422_v56 = vrot.slane %v365_v53, 4 }
 0x128   : > { %v424_v57 = vrot.slane %v394_v55, 4 }
 0x129   : > { %v423_v58 = vsel %vm333_vm0, %v418_v43, %v422_v56  ;;  %444 = vst [vmem:[%s708_s28 + $0x40] sm:$0xf] %v422_v56 }
 0x12a   : > { %442 = vst [vmem:[%s708_s28 + $0x30] sm:$0xff] %v423_v58  ;;  %v425_v59 = vsel %vm333_vm0, %v420_v45, %v424_v57 }
 0x12b   : > { %443 = vst [vmem:[%s708_s28 + $0x38] sm:$0xff] %v425_v59 }
 0x12c   : > { %445 = vst [vmem:[%s708_s28 + $0x48] sm:$0xf] %v424_v57 }
 0x12d PF: > { %s15_s20 = sadd.s32 1, %s608_s20   ;;  %s747_s18 = smov %s604_s19 }
 0x12e   : > { %p12_p5 = scmp.ge.s32.totalorder %s15_s20, 4   ;;  %s748_s19 = smov %s750_s21 }
 0x130   :  { %14 = sbr.rel (!%p12_p5) target bundleno = 2 (0x2), region = 70 }

</bundles_post_ra>
